<compile_context>
chip_gen: v7x
topology: tpu7x:2x2x1
jax: 0.10.0
libtpu: 0.0.40
codegen_flags: <defaults>
</compile_context>

<pallas_src>
import math

import jax
import jax.numpy as jnp
from jax.experimental import pallas as pl
from jax.experimental.pallas import tpu as pltpu


def _lpe_kernel(x_ref, pe_ref, o_ref, *, scale, compute_dtype):
    # x_ref : (TR, TC) tile of the flattened embeddings
    # pe_ref: (1, TC)  matching column tile of the flattened positional table
    # o_ref : (TR, TC) output tile
    x = x_ref[...].astype(compute_dtype)
    pe = pe_ref[...].astype(compute_dtype)        # (1, TC): sublane broadcast vs (TR, TC)
    o_ref[...] = (x * jnp.asarray(scale, compute_dtype) + pe).astype(o_ref.dtype)


def _device_kind() -> str:
    try:
        return jax.devices()[0].device_kind.lower()
    except Exception:
        return ""


def _is_v5e(kind: str) -> bool:
    return ("v5 lite" in kind) or ("v5e" in kind) or ("v5litepod" in kind)


def _vmem_budget_bytes(kind: str) -> int:
    # v5e: 16 MiB scoped-VMEM default -> stay well under it without an override.
    if _is_v5e(kind):
        return 10 * 1024 * 1024
    # v6e / v7x: 32 MiB scoped default -> ~24 MiB resident gives ~4 MiB x-tiles.
    return 24 * 1024 * 1024


def _compute_dtype(dtype, kind):
    dtype = jnp.dtype(dtype)
    if dtype == jnp.dtype(jnp.float32):
        return jnp.float32
    if dtype == jnp.dtype(jnp.bfloat16) and not _is_v5e(kind):
        return jnp.bfloat16           # v6e/v7x VPU is bf16-native: skip the f32 round-trip
    return jnp.float32                # v5e (no bf16 VPU) and any other narrow dtype


def _pick_tiles(B: int, N: int, itemsize: int, kind: str):
    # Row (sublane) tile: packing-aware multiple of 8 (8 f32 / 16 bf16 / 32 int8),
    # or the full batch dim when smaller (full-dim blocks are always legal).
    sub = 8 * max(1, 4 // itemsize)
    tr = B if B < sub else sub
    padded_tr = ((max(tr, 1) + 7) // 8) * 8       # VMEM pads sublanes to multiples of 8

    # Corrected resident-VMEM accounting: double-buffered x + out tiles plus the
    # double-buffered, sublane-padded PE tile:
    #   bytes ≈ itemsize * tc * (2*padded_tr + 2*padded_tr + 2*8)
    per_col_bytes = itemsize * (4 * padded_tr + 16)
    tc_cap = max(128, (_vmem_budget_bytes(kind) // per_col_bytes) // 128 * 128)

    if N <= 128:
        tc = N                                    # full-dim lane block (always legal)
    else:
        tc = min(tc_cap, max(128, (N // 128) * 128))
    return tr, tc


def learned_positional_encoding(embeddings: jax.Array,
                                learned_embeddings: jax.Array,
                                *,
                                donate_embeddings: bool = False) -> jax.Array:
    """embeddings: (B, S, D); learned_embeddings: (S, D)."""
    B, S, D = embeddings.shape
    assert learned_embeddings.shape == (S, D)
    scale = math.sqrt(float(D))                   # np.sqrt(embeddings.shape[-1])

    # Lane-dense 2D views (contiguous row-major reshapes; free at the XLA level).
    N = S * D
    x2d = embeddings.reshape(B, N)
    pe2d = learned_embeddings.reshape(1, N)

    itemsize = jnp.dtype(embeddings.dtype).itemsize
    kind = _device_kind()
    tr, tc = _pick_tiles(B, N, itemsize, kind)
    compute_dtype = _compute_dtype(embeddings.dtype, kind)

    kernel = lambda x_ref, pe_ref, o_ref: _lpe_kernel(
        x_ref, pe_ref, o_ref, scale=scale, compute_dtype=compute_dtype)

    # Columns OUTER, batch rows INNER: the PE block index (0, j) is constant across all
    # inner steps, so Pallas skips its re-DMA and the table is fetched once per column tile.
    grid = (pl.cdiv(N, tc), pl.cdiv(B, tr))

    out2d = pl.pallas_call(
        kernel,
        out_shape=jax.ShapeDtypeStruct((B, N), embeddings.dtype),
        grid_spec=pltpu.PrefetchScalarGridSpec(
            num_scalar_prefetch=0,
            grid=grid,
            in_specs=[
                pl.BlockSpec((tr, tc), lambda j, i: (i, j)),   # embeddings tile
                pl.BlockSpec((1, tc), lambda j, i: (0, j)),    # PE tile (outer axis only)
            ],
            out_specs=pl.BlockSpec((tr, tc), lambda j, i: (i, j)),
        ),
        compiler_params=pltpu.CompilerParams(
            dimension_semantics=("parallel", "parallel"),
        ),
        cost_estimate=pl.CostEstimate(
            flops=2 * B * N,
            transcendentals=0,
            # x read + out write + PE read exactly once (matches the reordered grid).
            bytes_accessed=(2 * B * N + N) * itemsize,
        ),
        # Matches PyTorch's in-place mutation semantics when the caller can donate
        # `embeddings`: drops the extra B*S*D HBM output allocation.
        input_output_aliases=({0: 0} if donate_embeddings else {}),
    )(x2d, pe2d)

    return out2d.reshape(B, S, D)


if __name__ == "__main__":
    B, S, D = 2, 8, 32  # batch, seq_len, d_in

    key = jax.random.PRNGKey(0)
    k_x, k_pe = jax.random.split(key)
    # Deterministic "parameter" init (stands in for torch.rand(seq_len, d_in))
    learned_embeddings = jax.random.uniform(k_pe, (S, D), dtype=jnp.float32)
    embeddings = jax.random.normal(k_x, (B, S, D), dtype=jnp.float32)

    out = learned_positional_encoding(embeddings, learned_embeddings)
    out = jax.block_until_ready(out)

    # Reference check in plain JAX
    ref = embeddings * jnp.sqrt(jnp.float32(D)) + learned_embeddings[None, :, :]
    assert out.shape == (B, S, D)
    assert jnp.allclose(out, ref, atol=1e-5, rtol=1e-5)

    print("KERNEL_OK")
</pallas_src>

<mosaic_0001>
module attributes {stable_mosaic.version = 11 : i64} {
  func.func @_lambda_(%arg0: i32, %arg1: i32, %arg2: memref<2x256xf32, #tpu.memory_space<vmem>>, %arg3: memref<1x256xf32, #tpu.memory_space<vmem>>, %arg4: memref<2x256xf32, #tpu.memory_space<vmem>>) attributes {dimension_semantics = [#tpu.dimension_semantics<parallel>, #tpu.dimension_semantics<parallel>], iteration_bounds = array<i64: 1, 1>, scalar_prefetch = 0 : i64, scratch_operands = 0 : i64, tpu.core_type = #tpu.core_type<tc>, window_params = [{transform_indices = @transform_0, window_bounds = array<i64: 2, 256>}, {transform_indices = @transform_1, window_bounds = array<i64: 1, 256>}, {transform_indices = @transform_2, window_bounds = array<i64: 2, 256>}]} {
    %c0 = arith.constant 0 : index
    %c0_0 = arith.constant 0 : index
    %0 = vector.load %arg2[%c0, %c0_0] : memref<2x256xf32, #tpu.memory_space<vmem>>, vector<2x256xf32>
    %c0_1 = arith.constant 0 : index
    %c0_2 = arith.constant 0 : index
    %1 = vector.load %arg3[%c0_1, %c0_2] : memref<1x256xf32, #tpu.memory_space<vmem>>, vector<1x256xf32>
    %cst = arith.constant 5.65685415 : f32
    %2 = vector.broadcast %cst : f32 to vector<2x256xf32>
    %3 = arith.mulf %0, %2 : vector<2x256xf32>
    %4 = vector.broadcast %1 : vector<1x256xf32> to vector<2x256xf32>
    %5 = arith.addf %3, %4 : vector<2x256xf32>
    %c0_3 = arith.constant 0 : index
    %c0_4 = arith.constant 0 : index
    %6 = vector.load %arg4[%c0_3, %c0_4] : memref<2x256xf32, #tpu.memory_space<vmem>>, vector<2x256xf32>
    tpu.vector_store %arg4[%c0_3, %c0_4], %5 {strides = array<i32>} : memref<2x256xf32, #tpu.memory_space<vmem>>, vector<2x256xf32>,
    return
  }
  func.func @transform_0(%arg0: i32, %arg1: i32) -> (i32, i32) {
    %c0_i32 = arith.constant 0 : i32
    return %arg1, %arg0 : i32, i32
  }
  func.func @transform_1(%arg0: i32, %arg1: i32) -> (i32, i32) {
    %c0_i32 = arith.constant 0 : i32
    %c0_i32_0 = arith.constant 0 : i32
    return %c0_i32, %arg0 : i32, i32
  }
  func.func @transform_2(%arg0: i32, %arg1: i32) -> (i32, i32) {
    %c0_i32 = arith.constant 0 : i32
    return %arg1, %arg0 : i32, i32
  }
}

</mosaic_0001>

<bundles_post_ra>
// kernel: tpu_custom_call.1
= control target key start
LH: loop header
LB: loop body
LE: loop exit
PB: predicated region body
PF: predicated region fallthrough
CT: control target
= control target key end

     0   :  { %7 = vsyncpa [#allocation3], 0  ;;  %s158_s0 = inlined_call_operand.hbm [shape: f32[2,256], index: 0, kind: input, shape index: {}]   ;;  %s159_s1 = inlined_call_operand.vmem [shape: f32[1,256], index: 1, kind: input, shape index: {}]   ;;  %s160_s2 = inlined_call_operand.hbm [shape: f32[2,256], index: 2, kind: output, shape index: {}]  }
   0x1   :  { %8 = vsyncpa [#allocation4], 0  ;;  %s113_s9 = smov [#allocation2]   ;;  %s65_s13 = scalar_lea.hbm %s158_s0, 64 }
   0x2   :  { %s15_s10 = sshll.u32 %s113_s9, 4  ;;  %p66_p0 = scmp.ne.s32.totalorder %s158_s0, %s65_s13  ;;  %s16_s10 = int_to_ptr.vmem [resolvable:$true] %s15_s10 }
   0x3   :  { %p69_p1 = scmp.lt.u32.totalorder %s65_s13, %s158_s0 }
   0x5   :  { %p71_p2 = pnand %p69_p1, %p66_p0 }
   0x7   :  { %74 = shalt.err (!%p71_p2)
}
   0x8   :  { %s75_s18 = scalar_lea.vmem %s16_s10, 64  ;;  %p80_p4 = scmp.lt.s32.totalorder %s16_s10, %s16_s10 }
   0x9   :  { %p76_p3 = scmp.ne.s32.totalorder %s16_s10, %s75_s18  ;;  %p81_p5 = scmp.lt.s32.totalorder %s75_s18, %s75_s18 }
   0xb   :  { %p82_p6 = por %p81_p5, %p80_p4 }
   0xd   :  { %p83_p7 = pnand %p82_p6, %p76_p3 }
   0xf   :  { %86 = shalt.err (!%p83_p7)
}
  0x10   :  { %18 = dma.hbm_to_vmem [thread:$0]  %s158_s0, 64, %s16_s10, [#allocation3]  }
  0x11   :  { %109 = dma.done.wait [#allocation3], 64  }
  0x12   :  { %110 = vsyncadd [#allocation3], 4294967232  ;;  %v28_v0 = vlaneseq  ;;  %v114_v1 = vmov 1983009808   ;;  %v24_v7 = vld [vmem:[#allocation2] sm:$0xf] }
  0x13   :  { %v38_v2 = vunpack.c.l.s4 %v114_v1  ;;  %v25_v8 = vld [vmem:[%s159_s1] sm:$0x3]  ;;  %v26_v12 = vmul.f32 5.656854, %v24_v7  ;;  %s115_s0 = smov [#allocation5]  }
  0x14   :  { %v29_v3 = vshrl.u32 %v28_v0, 7  ;;  %s53_s23 = sshll.u32 %s115_s0, 4  ;;  %s54_s23 = int_to_ptr.vmem [resolvable:$true] %s53_s23 }
  0x15   :  { %v39_v6 = vunpack.c.0.s8 %v38_v2  ;;  %s87_s24 = scalar_lea.vmem %s54_s23, 64  ;;  %p92_p9 = scmp.lt.s32.totalorder %s54_s23, %s54_s23 }
  0x16   :  { %v30_v4 = vsub.s32 0, %v29_v3  ;;  %v34_v5 = vsub.s32 1, %v29_v3  ;;  %p88_p8 = scmp.ne.s32.totalorder %s54_s23, %s87_s24  ;;  %p93_p10 = scmp.lt.s32.totalorder %s87_s24, %s87_s24 }
  0x17   :  { %v42_v11 = vsub.s32 %v39_v6, %v29_v3 }
  0x18   :  { %v31_v9 = vrot.slane %v25_v8, %v30_v4  ;;  %v35_v10 = vrot.slane %v25_v8, %v34_v5  ;;  %p94_p11 = por %p93_p10, %p92_p9 }
  0x1a   :  { %v36_v13 = vcombine.low %v31_v9, %v35_v10  ;;  %p95_p12 = pnand %p94_p11, %p88_p8 }
  0x1c   :  { %v43_v14 = vrot.slane %v36_v13, %v42_v11 }
  0x1e   :  { %v45_v15 = vadd.f32 %v43_v14, %v26_v12 }
  0x20   :  { %46 = vst [vmem:[#allocation5] sm:$0xf] %v45_v15 }
  0x21   :  { %98 = shalt.err (!%p95_p12)
}
  0x22   :  { %s99_s26 = scalar_lea.hbm %s160_s2, 64 }
  0x23   :  { %p100_p13 = scmp.ne.s32.totalorder %s160_s2, %s99_s26  ;;  %p103_p0 = scmp.lt.u32.totalorder %s99_s26, %s160_s2 }
  0x25   :  { %p105_p1 = pnand %p103_p0, %p100_p13 }
  0x27   :  { %108 = shalt.err (!%p105_p1)
}
  0x28   :  { %56 = dma.vmem_to_hbm [thread:$0]  %s54_s23, 64, %s160_s2, [#allocation4]  }
  0x29   :  { %111 = dma.done.wait [#allocation4], 64  }
  0x2a   :  { %112 = vsyncadd [#allocation4], 4294967232 }
  0x2b   :  { %60 = vsyncpa [#allocation3], 1 }
  0x2c   :  { %61 = vsyncpa [#allocation4], 1 }

</bundles_post_ra>
